<compile_context>
chip_gen: v7x
topology: tpu7x:2x2x1
jax: 0.10.0
libtpu: 0.0.40
codegen_flags: <defaults>
</compile_context>

<pallas_src>
import jax
import jax.numpy as jnp
from jax.experimental import pallas as pl
from jax.experimental.pallas import tpu as pltpu

IN_FEATURES = 5
OUT_FEATURES = 5

SUBLANE = 8
DEFAULT_ROW_TILE = 4096
VMEM_LIMIT_BYTES = 32 * 1024 * 1024


def _round_up(x, m):
    return (x + m - 1) // m * m


def linear_add_kernel(x_ref, wt_ref, b_ref, o_ref):
    # x_ref : (tm, K)  VMEM  activations, logical K=5 (Mosaic pads in vregs)
    # wt_ref: (K, N)   VMEM  pre-transposed weight, resident across the grid
    # b_ref : (1, N)   VMEM  fused (bias + add_vec), resident across the grid
    # o_ref : (tm, N)  VMEM
    y = jnp.dot(x_ref[...], wt_ref[...], preferred_element_type=jnp.float32)
    o_ref[...] = (y + b_ref[...]).astype(o_ref.dtype)


def make_model_forward(weight, bias, add_vec, *, row_tile=DEFAULT_ROW_TILE):
    """Build y = x @ weight.T + bias + add_vec (torch Linear weight: (out, in)).

    All input-independent prep is done once here; the returned callable is the
    jitted per-call path (no repeated transpose / vector fusion / pad ops).
    """
    out_f, in_f = weight.shape
    wt_f32 = jnp.asarray(weight, jnp.float32).T                        # (in, out)
    bvec = (jnp.asarray(bias, jnp.float32)
            + jnp.asarray(add_vec, jnp.float32)).reshape(1, out_f)     # f32 add

    def _forward(x):
        n, k = x.shape
        assert k == in_f
        # Matmul operand dtype follows x (bf16 x -> bf16 transfer + MXU),
        # accumulation and bias add stay in f32.
        wt = wt_f32.astype(x.dtype)

        # Row tile: multiple of the 8-row sublane; capped so double-buffered
        # x/out tiles (stored 128-lane padded in VMEM) stay inside every
        # generation's scoped VMEM.
        tm = min(row_tile, _round_up(n, SUBLANE))
        grid = (pl.cdiv(n, tm),)   # ragged last block: reads padded, writes masked

        return pl.pallas_call(
            linear_add_kernel,
            out_shape=jax.ShapeDtypeStruct((n, out_f), jnp.float32),
            grid=grid,
            in_specs=[
                # Lane dims equal the full array dims (5): no HBM padding.
                pl.BlockSpec((tm, in_f), lambda i: (i, 0),
                             memory_space=pltpu.MemorySpace.VMEM),
                pl.BlockSpec((in_f, out_f), lambda i: (0, 0),
                             memory_space=pltpu.MemorySpace.VMEM),
                pl.BlockSpec((1, out_f), lambda i: (0, 0),
                             memory_space=pltpu.MemorySpace.VMEM),
            ],
            out_specs=pl.BlockSpec((tm, out_f), lambda i: (i, 0),
                                   memory_space=pltpu.MemorySpace.VMEM),
            compiler_params=pltpu.CompilerParams(
                dimension_semantics=("parallel",),
                vmem_limit_bytes=VMEM_LIMIT_BYTES,
            ),
        )(x, wt, bvec)

    return jax.jit(_forward)


if __name__ == "__main__":
    key = jax.random.PRNGKey(0)
    kx, kw, kb = jax.random.split(key, 3)

    # Deterministic params mimicking torch.nn.Linear(5, 5) init:
    # uniform(-1/sqrt(in_features), 1/sqrt(in_features))
    bound = 1.0 / (IN_FEATURES ** 0.5)
    weight = jax.random.uniform(
        kw, (OUT_FEATURES, IN_FEATURES), jnp.float32, -bound, bound
    )
    bias = jax.random.uniform(kb, (OUT_FEATURES,), jnp.float32, -bound, bound)
    add_vec = jnp.array([1.0, 2.0, 3.0, 4.0, 5.0], dtype=jnp.float32)

    # x1 = torch.randn(1, 5)
    x1 = jax.random.normal(kx, (1, IN_FEATURES), jnp.float32)

    forward = make_model_forward(weight, bias, add_vec)
    out = jax.block_until_ready(forward(x1))

    # Reference check in plain JAX.
    ref = x1 @ weight.T + bias + add_vec
    assert out.shape == (1, OUT_FEATURES)
    assert jnp.allclose(out, ref, atol=1e-5), (out, ref)

    print("KERNEL_OK")
</pallas_src>

<mosaic_0001>
module attributes {stable_mosaic.version = 11 : i64} {
  func.func @linear_add_kernel(%arg0: i32, %arg1: memref<8x5xf32, #tpu.memory_space<vmem>>, %arg2: memref<5x5xf32, #tpu.memory_space<vmem>>, %arg3: memref<1x5xf32, #tpu.memory_space<vmem>>, %arg4: memref<8x5xf32, #tpu.memory_space<vmem>>) attributes {dimension_semantics = [#tpu.dimension_semantics<parallel>], iteration_bounds = array<i64: 1>, scalar_prefetch = 0 : i64, scratch_operands = 0 : i64, tpu.core_type = #tpu.core_type<tc>, window_params = [{transform_indices = @transform_0, window_bounds = array<i64: 8, 5>}, {pipeline_mode = #tpu.pipeline_mode<synchronous>, transform_indices = @transform_1, window_bounds = array<i64: 5, 5>}, {pipeline_mode = #tpu.pipeline_mode<synchronous>, transform_indices = @transform_2, window_bounds = array<i64: 1, 5>}, {transform_indices = @transform_3, window_bounds = array<i64: 8, 5>}]} {
    %c0 = arith.constant 0 : index
    %c0_0 = arith.constant 0 : index
    %0 = vector.load %arg1[%c0, %c0_0] : memref<8x5xf32, #tpu.memory_space<vmem>>, vector<8x5xf32>
    %c0_1 = arith.constant 0 : index
    %c0_2 = arith.constant 0 : index
    %1 = vector.load %arg2[%c0_1, %c0_2] : memref<5x5xf32, #tpu.memory_space<vmem>>, vector<5x5xf32>
    %cst = arith.constant dense<0.000000e+00> : vector<8x5xf32>
    %2 = tpu.matmul %0, %1, %cst {dimension_numbers = #tpu.dot_dimension_numbers<[1], [0], [0], [1], [0, 0, 1, 1], [], []>} : vector<8x5xf32>, vector<5x5xf32>, vector<8x5xf32> -> vector<8x5xf32>
    %c0_3 = arith.constant 0 : index
    %c0_4 = arith.constant 0 : index
    %3 = vector.load %arg3[%c0_3, %c0_4] : memref<1x5xf32, #tpu.memory_space<vmem>>, vector<1x5xf32>
    %4 = vector.broadcast %3 : vector<1x5xf32> to vector<8x5xf32>
    %5 = arith.addf %2, %4 : vector<8x5xf32>
    %c0_5 = arith.constant 0 : index
    %c0_6 = arith.constant 0 : index
    %6 = vector.load %arg4[%c0_5, %c0_6] : memref<8x5xf32, #tpu.memory_space<vmem>>, vector<8x5xf32>
    tpu.vector_store %arg4[%c0_5, %c0_6], %5 {strides = array<i32>} : memref<8x5xf32, #tpu.memory_space<vmem>>, vector<8x5xf32>,
    return
  }
  func.func @transform_0(%arg0: i32) -> (i32, i32) {
    %c0_i32 = arith.constant 0 : i32
    %c0_i32_0 = arith.constant 0 : i32
    return %arg0, %c0_i32 : i32, i32
  }
  func.func @transform_1(%arg0: i32) -> (i32, i32) {
    %c0_i32 = arith.constant 0 : i32
    %c0_i32_0 = arith.constant 0 : i32
    %c0_i32_1 = arith.constant 0 : i32
    return %c0_i32, %c0_i32_0 : i32, i32
  }
  func.func @transform_2(%arg0: i32) -> (i32, i32) {
    %c0_i32 = arith.constant 0 : i32
    %c0_i32_0 = arith.constant 0 : i32
    %c0_i32_1 = arith.constant 0 : i32
    return %c0_i32, %c0_i32_0 : i32, i32
  }
  func.func @transform_3(%arg0: i32) -> (i32, i32) {
    %c0_i32 = arith.constant 0 : i32
    %c0_i32_0 = arith.constant 0 : i32
    return %arg0, %c0_i32 : i32, i32
  }
}

</mosaic_0001>

<bundles_post_ra>
// kernel: _forward.1
= control target key start
LH: loop header
LB: loop body
LE: loop exit
PB: predicated region body
PF: predicated region fallthrough
CT: control target
= control target key end

     0   :  { %8 = vsyncpa [#allocation3], 0  ;;  %s308_s0 = inlined_call_operand.hbm [shape: f32[1,5], index: 0, kind: input, shape index: {}]   ;;  %s309_s1 = inlined_call_operand.hbm [shape: f32[5,5], index: 1, kind: input, shape index: {}]   ;;  %s310_s2 = inlined_call_operand.vmem [shape: f32[1,5], index: 2, kind: input, shape index: {}]   ;;  %s311_s3 = inlined_call_operand.hbm [shape: f32[1,5], index: 3, kind: output, shape index: {}]  }
   0x1   :  { %9 = vsyncpa [#allocation6], 0 }
   0x2   :  { %10 = vsyncpa [#allocation4], 0 }
   0x3   :  { %15 = vsyncadd [#allocation3], 112  ;;  %s236_s12 = smov [#allocation2]   ;;  %s164_s16 = scalar_lea.hbm %s308_s0, 16 }
   0x4   :  { %s16_s13 = sshll.u32 %s236_s12, 4  ;;  %p165_p0 = scmp.ne.s32.totalorder %s308_s0, %s164_s16  ;;  %s17_s13 = int_to_ptr.vmem [resolvable:$true] %s16_s13 }
   0x5   :  { %p168_p1 = scmp.lt.u32.totalorder %s164_s16, %s308_s0 }
   0x7   :  { %p170_p2 = pnand %p168_p1, %p165_p0 }
   0x9   :  { %173 = shalt.err (!%p170_p2)
}
   0xa   :  { %s174_s21 = scalar_lea.vmem %s17_s13, 16  ;;  %s178_s22 = scalar_lea.vmem %s17_s13, 128 }
   0xb   :  { %p175_p3 = scmp.ne.s32.totalorder %s17_s13, %s174_s21  ;;  %p179_p4 = scmp.lt.s32.totalorder %s17_s13, %s17_s13 }
   0xc   :  { %p180_p5 = scmp.lt.s32.totalorder %s178_s22, %s174_s21 }
   0xe   :  { %p181_p6 = por %p180_p5, %p179_p4 }
  0x10   :  { %p182_p7 = pnand %p181_p6, %p175_p3 }
  0x12   :  { %185 = shalt.err (!%p182_p7)
}
  0x13   :  { %s237_s23 = smov 16   ;;  %s238_s24 = smov 1  }
  0x14   :  { %22 = dma.hbm_to_vmem [thread:$0]  %s308_s0, 16, %s17_s13, [#allocation3], %s237_s23, %s237_s23, %s238_s24  }
  0x15   :  { %s239_s27 = smov [#allocation5]   ;;  %s186_s4 = scalar_lea.hbm %s309_s1, 128 }
  0x16   :  { %s29_s28 = sshll.u32 %s239_s27, 4  ;;  %p187_p8 = scmp.ne.s32.totalorder %s309_s1, %s186_s4  ;;  %s30_s28 = int_to_ptr.vmem [resolvable:$true] %s29_s28 }
  0x17   :  { %p190_p9 = scmp.lt.u32.totalorder %s186_s4, %s309_s1 }
  0x19   :  { %p192_p10 = pnand %p190_p9, %p187_p8 }
  0x1b   :  { %195 = shalt.err (!%p192_p10)
}
  0x1c   :  { %s196_s9 = scalar_lea.vmem %s30_s28, 128  ;;  %p201_p12 = scmp.lt.s32.totalorder %s30_s28, %s30_s28 }
  0x1d   :  { %p197_p11 = scmp.ne.s32.totalorder %s30_s28, %s196_s9  ;;  %p202_p13 = scmp.lt.s32.totalorder %s196_s9, %s196_s9 }
  0x1f   :  { %p203_p0 = por %p202_p13, %p201_p12 }
  0x21   :  { %p204_p1 = pnand %p203_p0, %p197_p11 }
  0x23   :  { %207 = shalt.err (!%p204_p1)
}
  0x24   :  { %32 = dma.hbm_to_vmem [thread:$0]  %s309_s1, 128, %s30_s28, [#allocation6]  }
  0x25   :  { %230 = dma.done.wait [#allocation3], 128  }
  0x26   :  { %231 = vsyncadd [#allocation3], 4294967168 }
  0x27   :  { %232 = dma.done.wait [#allocation6], 128  }
  0x28   :  { %233 = vsyncadd [#allocation6], 4294967168  ;;  %v240_v0 = vmov 0.0   ;;  %vm241_vm0 = vmmov 0   ;;  %vm54_vm1 = vcmask 1044480   ;;  %vm50_vm2 = vcmask 39936  }
  0x29   :  { %152 = vmatprep.subr.mxu0 %v240_v0  ;;  %154 = vmatprep.mubr.msk.f32.mxu0 %vm241_vm0, %v240_v0  ;;  %v42_v1 = vld [vmem:[#allocation5] sm:$0x1f]  ;;  %v41_v2 = vld [vmem:[#allocation2] sm:$0xff] }
  0x2a   :  { %153 = vmatpush3.msk.msra.mxu0 %vm54_vm1, %v42_v1  ;;  %v147_v3 = vld [vmem:[%s310_s2] ss:$0 sm:$0xff] }
  0x2b   :  { %155 = vmatmul.mubr.msk.f32.vlgmr.msra.gmra.mrb[0].mxu0 %vm50_vm2, %v41_v2 }
  0xfe   :  { %v124_v4 = vpop.f32.mrb[0].mxu0 }
  0xff   :  { %v125_v5 = vadd.f32 %v147_v3, %v124_v4  ;;  %v156_v6 = vpop.f32.mrb[1].mxu0 }
 0x101   :  { %128 = vst.msk [vmem:[#allocation7] sm:$0xff] %vm50_vm2, %v125_v5 }
 0x102   :  { %133 = vsyncadd [#allocation4], 112  ;;  %s242_s1 = smov [#allocation7]  }
 0x103   :  { %s134_s13 = sshll.u32 %s242_s1, 4  ;;  %s135_s13 = int_to_ptr.vmem [resolvable:$true] %s134_s13 }
 0x104   :  { %s208_s14 = scalar_lea.vmem %s135_s13, 16  ;;  %s212_s15 = scalar_lea.vmem %s135_s13, 128 }
 0x105   :  { %p209_p2 = scmp.ne.s32.totalorder %s135_s13, %s208_s14  ;;  %p213_p3 = scmp.lt.s32.totalorder %s135_s13, %s135_s13 }
 0x106   :  { %p214_p4 = scmp.lt.s32.totalorder %s212_s15, %s208_s14 }
 0x108   :  { %p215_p5 = por %p214_p4, %p213_p3 }
 0x10a   :  { %p216_p6 = pnand %p215_p5, %p209_p2 }
 0x10c   :  { %219 = shalt.err (!%p216_p6)
}
 0x10d   :  { %s220_s2 = scalar_lea.hbm %s311_s3, 16 }
 0x10e   :  { %p221_p7 = scmp.ne.s32.totalorder %s311_s3, %s220_s2  ;;  %p224_p8 = scmp.lt.u32.totalorder %s220_s2, %s311_s3 }
 0x110   :  { %p226_p9 = pnand %p224_p8, %p221_p7 }
 0x112   :  { %229 = shalt.err (!%p226_p9)
}
 0x113   :  { %140 = dma.vmem_to_hbm [thread:$0]  %s135_s13, 16, %s311_s3, [#allocation4], %s237_s23, %s237_s23, %s238_s24  }
 0x114   :  { %234 = dma.done.wait [#allocation4], 128  }
 0x115   :  { %235 = vsyncadd [#allocation4], 4294967168 }
 0x116   :  { %144 = vsyncpa [#allocation3], 1 }
 0x117   :  { %145 = vsyncpa [#allocation6], 1 }
 0x118   :  { %146 = vsyncpa [#allocation4], 1 }

</bundles_post_ra>
